<compile_context>
chip_gen: v5e
topology: v5e:2x2
jax: 0.10.0
libtpu: 0.0.40
codegen_flags: <defaults>
</compile_context>

<pallas_src>
import functools

import jax
import jax.numpy as jnp
from jax import lax
from jax.experimental import pallas as pl
from jax.experimental.pallas import tpu as pltpu


def _lif_kernel(params_ref, v_init_ref, x_ref, v_out_ref, spike_ref, *,
                rows, t_block):
    """One (neuron-block, time-block) grid step of the fused LIF update.

    params_ref : SMEM (4,)                 [V_rest, V_threshold, V_reset, tau]
    v_init_ref : VMEM (rows, blk_n)        initial membrane potential (t-block 0 only)
    x_ref      : VMEM (t_block*rows, blk_n) synaptic input slab for this time-block
    v_out_ref  : VMEM (rows, blk_n)        resident accumulator holding V; final state
    spike_ref  : VMEM (t_block*rows, blk_n) int8 spike slab for this time-block
    """
    tb = pl.program_id(1)

    # Initialize the resident V accumulator from the state input on the first block.
    @pl.when(tb == 0)
    def _():
        v_out_ref[...] = v_init_ref[...]

    v_rest = params_ref[0]
    v_thr = params_ref[1]
    v_reset = params_ref[2]
    tau = params_ref[3]

    v = v_out_ref[...]
    # Statically unrolled time loop (t_block is a small Python int); all slices are
    # static, so loads/stores are simple (sub-)tile accesses.
    for t in range(t_block):
        x = x_ref[t * rows:(t + 1) * rows, :]
        v = v + (v_rest - v + x) / tau          # true division: torch semantics
        spike = v >= v_thr
        spike_ref[t * rows:(t + 1) * rows, :] = spike.astype(jnp.int8)
        v = jnp.where(spike, v_reset, v)
    v_out_ref[...] = v


def _choose_blocks(T, R, N, *, budget_bytes=12 * 1024 * 1024, max_t_unroll=32):
    """Pick (t_block, blk_n) maximizing bytes-per-grid-step under a VMEM budget."""
    cand_n = {N}                                    # full-extent block always legal
    if N % 128 == 0:
        cand_n |= {b for b in range(128, N + 1, 128) if N % b == 0}
    cand_t = {t for t in range(1, T + 1)
              if T % t == 0 and t <= max_t_unroll and ((t * R) % 8 == 0 or t == T)}
    if not cand_t:
        cand_t = {1}

    best_key, best = None, (min(cand_t), min(cand_n))
    for t in sorted(cand_t):
        for bn in sorted(cand_n):
            # 2x double-buffered x (f32) + 2x spikes (i8) + ~4 buffers of V state (f32)
            ws = 2 * t * R * bn * 4 + 2 * t * R * bn * 1 + 4 * R * bn * 4
            if ws > budget_bytes:
                continue
            # Prefer: largest slab, then 32-row alignment (unmasked int8 stores),
            # then deeper time block.
            key = (t * bn, (t * R) % 32 == 0, t)
            if best_key is None or key > best_key:
                best_key, best = key, (t, bn)
    return best


def lif_forward(params, v_state, synaptic_input):
    """Fused multi-timestep LIF forward over a neuron population.

    params         : float32 (4,)      [V_rest, V_threshold, V_reset, tau_membrane]
    v_state        : float32 (R, N)    current membrane potential per neuron
    synaptic_input : float32 (T, R, N) input current per timestep / neuron
    returns (V_final float32 (R, N), spikes int8 (T, R, N))
    """
    T, R, N = synaptic_input.shape
    assert v_state.shape == (R, N), (v_state.shape, (R, N))

    t_block, blk_n = _choose_blocks(T, R, N)
    n_blocks = N // blk_n
    n_tblocks = T // t_block

    params = params.astype(jnp.float32)
    v_state = v_state.astype(jnp.float32)
    x2 = synaptic_input.astype(jnp.float32).reshape(T * R, N)   # (T*R, N), lane-dense

    kernel = functools.partial(_lif_kernel, rows=R, t_block=t_block)

    grid = (n_blocks, n_tblocks)  # neuron blocks: parallel; time blocks: state carry
    smem_spec = pl.BlockSpec(memory_space=pltpu.MemorySpace.SMEM)
    v_spec = pl.BlockSpec((R, blk_n), lambda n, tb: (0, n))          # resident over tb
    x_spec = pl.BlockSpec((t_block * R, blk_n), lambda n, tb: (tb, n))
    spike_spec = pl.BlockSpec((t_block * R, blk_n), lambda n, tb: (tb, n))

    v_final, spikes2 = pl.pallas_call(
        kernel,
        grid=grid,
        in_specs=[smem_spec, v_spec, x_spec],
        out_specs=(v_spec, spike_spec),
        out_shape=(
            jax.ShapeDtypeStruct((R, N), jnp.float32),
            jax.ShapeDtypeStruct((T * R, N), jnp.int8),
        ),
        compiler_params=pltpu.CompilerParams(
            dimension_semantics=("parallel", "arbitrary"),
            vmem_limit_bytes=32 * 1024 * 1024,
        ),
    )(params, v_state, x2)
    return v_final, spikes2.reshape(T, R, N)


def lif_reference(params, v0, x_seq):
    """Pure-JAX reference of the torch semantics (true division by tau)."""
    v_rest, v_thr, v_reset, tau = params[0], params[1], params[2], params[3]

    def step(v, x):
        v_new = v + (v_rest - v + x) / tau
        spike = v_new >= v_thr
        return jnp.where(spike, v_reset, v_new), spike.astype(jnp.int8)

    v_final, spikes = lax.scan(step, v0, x_seq)
    return v_final, spikes


if __name__ == "__main__":
    # Deterministic parameter init, matching the module __init__ defaults.
    V_rest, V_threshold, V_reset, tau_membrane = -70.0, -50.0, -65.0, 20.0
    params = jnp.array([V_rest, V_threshold, V_reset, tau_membrane], jnp.float32)

    # Small population / short time window: 8 timesteps, 8 x 384 = 3072 neurons.
    # N = 384 is lane-dense; at this size the whole problem runs in ONE grid step.
    T, R, N = 8, 8, 384
    v0 = jnp.full((R, N), V_rest, dtype=jnp.float32)

    key = jax.random.PRNGKey(0)
    x_seq = jax.random.uniform(key, (T, R, N), dtype=jnp.float32,
                               minval=0.0, maxval=500.0)

    v_ref, spikes_ref = lif_reference(params, v0, x_seq)

    v_out, spikes = lif_forward(params, v0, x_seq)
    jax.block_until_ready((v_out, spikes))

    assert jnp.allclose(v_out, v_ref, atol=1e-3, rtol=1e-5), "membrane potential mismatch"
    assert jnp.array_equal(spikes, spikes_ref), "spike pattern mismatch"

    # Also exercise the single-step case (one forward() call of the original module).
    v1, s1 = lif_forward(params, v0, x_seq[:1])
    jax.block_until_ready((v1, s1))
    v1_ref, s1_ref = lif_reference(params, v0, x_seq[:1])
    assert jnp.allclose(v1, v1_ref, atol=1e-3, rtol=1e-5)
    assert jnp.array_equal(s1, s1_ref)

    # TODO(synk): the torch module's Python-side mutable state (self.V, the scalar
    # self.spike_occurred bool) has no in-kernel equivalent; state is returned
    # functionally (V_final, per-step spike tensor) instead.
    print("KERNEL_OK")
</pallas_src>

<mosaic_0001>
module attributes {stable_mosaic.version = 11 : i64} {
  func.func @_lif_kernel(%arg0: i32, %arg1: i32, %arg2: memref<4xf32, #tpu.memory_space<smem>>, %arg3: memref<8x384xf32, #tpu.memory_space<vmem>>, %arg4: memref<64x384xf32, #tpu.memory_space<vmem>>, %arg5: memref<8x384xf32, #tpu.memory_space<vmem>>, %arg6: memref<64x384xi8, #tpu.memory_space<vmem>>) attributes {dimension_semantics = [#tpu.dimension_semantics<parallel>, #tpu.dimension_semantics<arbitrary>], iteration_bounds = array<i64: 1, 1>, scalar_prefetch = 0 : i64, scratch_operands = 0 : i64, tpu.core_type = #tpu.core_type<tc>, window_params = [{transform_indices = @transform_0, window_bounds = array<i64: 4>}, {transform_indices = @transform_1, window_bounds = array<i64: 8, 384>}, {transform_indices = @transform_2, window_bounds = array<i64: 64, 384>}, {transform_indices = @transform_3, window_bounds = array<i64: 8, 384>}, {transform_indices = @transform_4, window_bounds = array<i64: 64, 384>}]} {
    %c0_i32 = arith.constant 0 : i32
    %0 = arith.cmpi eq, %arg1, %c0_i32 : i32
    %1 = arith.extui %0 : i1 to i32
    %c0_i32_0 = arith.constant 0 : i32
    %2 = arith.cmpi ne, %1, %c0_i32_0 : i32
    scf.if %2 {
      %c0_30 = arith.constant 0 : index
      %c0_31 = arith.constant 0 : index
      %113 = vector.load %arg3[%c0_30, %c0_31] : memref<8x384xf32, #tpu.memory_space<vmem>>, vector<8x384xf32>
      %c0_32 = arith.constant 0 : index
      %c0_33 = arith.constant 0 : index
      %114 = vector.load %arg5[%c0_32, %c0_33] : memref<8x384xf32, #tpu.memory_space<vmem>>, vector<8x384xf32>
      tpu.vector_store %arg5[%c0_32, %c0_33], %113 {strides = array<i32>} : memref<8x384xf32, #tpu.memory_space<vmem>>, vector<8x384xf32>,
    } else {
    }
    %c0 = arith.constant 0 : index
    %3 = memref.load %arg2[%c0] : memref<4xf32, #tpu.memory_space<smem>>
    %c1 = arith.constant 1 : index
    %4 = memref.load %arg2[%c1] : memref<4xf32, #tpu.memory_space<smem>>
    %c2 = arith.constant 2 : index
    %5 = memref.load %arg2[%c2] : memref<4xf32, #tpu.memory_space<smem>>
    %c3 = arith.constant 3 : index
    %6 = memref.load %arg2[%c3] : memref<4xf32, #tpu.memory_space<smem>>
    %c0_1 = arith.constant 0 : index
    %c0_2 = arith.constant 0 : index
    %7 = vector.load %arg5[%c0_1, %c0_2] : memref<8x384xf32, #tpu.memory_space<vmem>>, vector<8x384xf32>
    %c0_3 = arith.constant 0 : index
    %c0_4 = arith.constant 0 : index
    %8 = vector.load %arg4[%c0_3, %c0_4] : memref<64x384xf32, #tpu.memory_space<vmem>>, vector<8x384xf32>
    %9 = vector.broadcast %3 : f32 to vector<8x384xf32>
    %10 = arith.subf %9, %7 : vector<8x384xf32>
    %11 = arith.addf %10, %8 : vector<8x384xf32>
    %12 = vector.broadcast %6 : f32 to vector<8x384xf32>
    %13 = arith.divf %11, %12 : vector<8x384xf32>
    %14 = arith.addf %7, %13 : vector<8x384xf32>
    %15 = vector.broadcast %4 : f32 to vector<8x384xf32>
    %16 = arith.cmpf oge, %14, %15 : vector<8x384xf32>
    %17 = arith.extui %16 : vector<8x384xi1> to vector<8x384xi8>
    %c0_5 = arith.constant 0 : index
    %c0_6 = arith.constant 0 : index
    %18 = vector.load %arg6[%c0_5, %c0_6] : memref<64x384xi8, #tpu.memory_space<vmem>>, vector<8x384xi8>
    tpu.vector_store %arg6[%c0_5, %c0_6], %17 {strides = array<i32>} : memref<64x384xi8, #tpu.memory_space<vmem>>, vector<8x384xi8>,
    %19 = vector.broadcast %5 : f32 to vector<8x384xf32>
    %20 = arith.select %16, %19, %14 : vector<8x384xi1>, vector<8x384xf32>
    %c8 = arith.constant 8 : index
    %c0_7 = arith.constant 0 : index
    %21 = vector.load %arg4[%c8, %c0_7] : memref<64x384xf32, #tpu.memory_space<vmem>>, vector<8x384xf32>
    %22 = vector.broadcast %3 : f32 to vector<8x384xf32>
    %23 = arith.subf %22, %20 : vector<8x384xf32>
    %24 = arith.addf %23, %21 : vector<8x384xf32>
    %25 = vector.broadcast %6 : f32 to vector<8x384xf32>
    %26 = arith.divf %24, %25 : vector<8x384xf32>
    %27 = arith.addf %20, %26 : vector<8x384xf32>
    %28 = vector.broadcast %4 : f32 to vector<8x384xf32>
    %29 = arith.cmpf oge, %27, %28 : vector<8x384xf32>
    %30 = arith.extui %29 : vector<8x384xi1> to vector<8x384xi8>
    %c8_8 = arith.constant 8 : index
    %c0_9 = arith.constant 0 : index
    %31 = vector.load %arg6[%c8_8, %c0_9] : memref<64x384xi8, #tpu.memory_space<vmem>>, vector<8x384xi8>
    tpu.vector_store %arg6[%c8_8, %c0_9], %30 {strides = array<i32>} : memref<64x384xi8, #tpu.memory_space<vmem>>, vector<8x384xi8>,
    %32 = vector.broadcast %5 : f32 to vector<8x384xf32>
    %33 = arith.select %29, %32, %27 : vector<8x384xi1>, vector<8x384xf32>
    %c16 = arith.constant 16 : index
    %c0_10 = arith.constant 0 : index
    %34 = vector.load %arg4[%c16, %c0_10] : memref<64x384xf32, #tpu.memory_space<vmem>>, vector<8x384xf32>
    %35 = vector.broadcast %3 : f32 to vector<8x384xf32>
    %36 = arith.subf %35, %33 : vector<8x384xf32>
    %37 = arith.addf %36, %34 : vector<8x384xf32>
    %38 = vector.broadcast %6 : f32 to vector<8x384xf32>
    %39 = arith.divf %37, %38 : vector<8x384xf32>
    %40 = arith.addf %33, %39 : vector<8x384xf32>
    %41 = vector.broadcast %4 : f32 to vector<8x384xf32>
    %42 = arith.cmpf oge, %40, %41 : vector<8x384xf32>
    %43 = arith.extui %42 : vector<8x384xi1> to vector<8x384xi8>
    %c16_11 = arith.constant 16 : index
    %c0_12 = arith.constant 0 : index
    %44 = vector.load %arg6[%c16_11, %c0_12] : memref<64x384xi8, #tpu.memory_space<vmem>>, vector<8x384xi8>
    tpu.vector_store %arg6[%c16_11, %c0_12], %43 {strides = array<i32>} : memref<64x384xi8, #tpu.memory_space<vmem>>, vector<8x384xi8>,
    %45 = vector.broadcast %5 : f32 to vector<8x384xf32>
    %46 = arith.select %42, %45, %40 : vector<8x384xi1>, vector<8x384xf32>
    %c24 = arith.constant 24 : index
    %c0_13 = arith.constant 0 : index
    %47 = vector.load %arg4[%c24, %c0_13] : memref<64x384xf32, #tpu.memory_space<vmem>>, vector<8x384xf32>
    %48 = vector.broadcast %3 : f32 to vector<8x384xf32>
    %49 = arith.subf %48, %46 : vector<8x384xf32>
    %50 = arith.addf %49, %47 : vector<8x384xf32>
    %51 = vector.broadcast %6 : f32 to vector<8x384xf32>
    %52 = arith.divf %50, %51 : vector<8x384xf32>
    %53 = arith.addf %46, %52 : vector<8x384xf32>
    %54 = vector.broadcast %4 : f32 to vector<8x384xf32>
    %55 = arith.cmpf oge, %53, %54 : vector<8x384xf32>
    %56 = arith.extui %55 : vector<8x384xi1> to vector<8x384xi8>
    %c24_14 = arith.constant 24 : index
    %c0_15 = arith.constant 0 : index
    %57 = vector.load %arg6[%c24_14, %c0_15] : memref<64x384xi8, #tpu.memory_space<vmem>>, vector<8x384xi8>
    tpu.vector_store %arg6[%c24_14, %c0_15], %56 {strides = array<i32>} : memref<64x384xi8, #tpu.memory_space<vmem>>, vector<8x384xi8>,
    %58 = vector.broadcast %5 : f32 to vector<8x384xf32>
    %59 = arith.select %55, %58, %53 : vector<8x384xi1>, vector<8x384xf32>
    %c32 = arith.constant 32 : index
    %c0_16 = arith.constant 0 : index
    %60 = vector.load %arg4[%c32, %c0_16] : memref<64x384xf32, #tpu.memory_space<vmem>>, vector<8x384xf32>
    %61 = vector.broadcast %3 : f32 to vector<8x384xf32>
    %62 = arith.subf %61, %59 : vector<8x384xf32>
    %63 = arith.addf %62, %60 : vector<8x384xf32>
    %64 = vector.broadcast %6 : f32 to vector<8x384xf32>
    %65 = arith.divf %63, %64 : vector<8x384xf32>
    %66 = arith.addf %59, %65 : vector<8x384xf32>
    %67 = vector.broadcast %4 : f32 to vector<8x384xf32>
    %68 = arith.cmpf oge, %66, %67 : vector<8x384xf32>
    %69 = arith.extui %68 : vector<8x384xi1> to vector<8x384xi8>
    %c32_17 = arith.constant 32 : index
    %c0_18 = arith.constant 0 : index
    %70 = vector.load %arg6[%c32_17, %c0_18] : memref<64x384xi8, #tpu.memory_space<vmem>>, vector<8x384xi8>
    tpu.vector_store %arg6[%c32_17, %c0_18], %69 {strides = array<i32>} : memref<64x384xi8, #tpu.memory_space<vmem>>, vector<8x384xi8>,
    %71 = vector.broadcast %5 : f32 to vector<8x384xf32>
    %72 = arith.select %68, %71, %66 : vector<8x384xi1>, vector<8x384xf32>
    %c40 = arith.constant 40 : index
    %c0_19 = arith.constant 0 : index
    %73 = vector.load %arg4[%c40, %c0_19] : memref<64x384xf32, #tpu.memory_space<vmem>>, vector<8x384xf32>
    %74 = vector.broadcast %3 : f32 to vector<8x384xf32>
    %75 = arith.subf %74, %72 : vector<8x384xf32>
    %76 = arith.addf %75, %73 : vector<8x384xf32>
    %77 = vector.broadcast %6 : f32 to vector<8x384xf32>
    %78 = arith.divf %76, %77 : vector<8x384xf32>
    %79 = arith.addf %72, %78 : vector<8x384xf32>
    %80 = vector.broadcast %4 : f32 to vector<8x384xf32>
    %81 = arith.cmpf oge, %79, %80 : vector<8x384xf32>
    %82 = arith.extui %81 : vector<8x384xi1> to vector<8x384xi8>
    %c40_20 = arith.constant 40 : index
    %c0_21 = arith.constant 0 : index
    %83 = vector.load %arg6[%c40_20, %c0_21] : memref<64x384xi8, #tpu.memory_space<vmem>>, vector<8x384xi8>
    tpu.vector_store %arg6[%c40_20, %c0_21], %82 {strides = array<i32>} : memref<64x384xi8, #tpu.memory_space<vmem>>, vector<8x384xi8>,
    %84 = vector.broadcast %5 : f32 to vector<8x384xf32>
    %85 = arith.select %81, %84, %79 : vector<8x384xi1>, vector<8x384xf32>
    %c48 = arith.constant 48 : index
    %c0_22 = arith.constant 0 : index
    %86 = vector.load %arg4[%c48, %c0_22] : memref<64x384xf32, #tpu.memory_space<vmem>>, vector<8x384xf32>
    %87 = vector.broadcast %3 : f32 to vector<8x384xf32>
    %88 = arith.subf %87, %85 : vector<8x384xf32>
    %89 = arith.addf %88, %86 : vector<8x384xf32>
    %90 = vector.broadcast %6 : f32 to vector<8x384xf32>
    %91 = arith.divf %89, %90 : vector<8x384xf32>
    %92 = arith.addf %85, %91 : vector<8x384xf32>
    %93 = vector.broadcast %4 : f32 to vector<8x384xf32>
    %94 = arith.cmpf oge, %92, %93 : vector<8x384xf32>
    %95 = arith.extui %94 : vector<8x384xi1> to vector<8x384xi8>
    %c48_23 = arith.constant 48 : index
    %c0_24 = arith.constant 0 : index
    %96 = vector.load %arg6[%c48_23, %c0_24] : memref<64x384xi8, #tpu.memory_space<vmem>>, vector<8x384xi8>
    tpu.vector_store %arg6[%c48_23, %c0_24], %95 {strides = array<i32>} : memref<64x384xi8, #tpu.memory_space<vmem>>, vector<8x384xi8>,
    %97 = vector.broadcast %5 : f32 to vector<8x384xf32>
    %98 = arith.select %94, %97, %92 : vector<8x384xi1>, vector<8x384xf32>
    %c56 = arith.constant 56 : index
    %c0_25 = arith.constant 0 : index
    %99 = vector.load %arg4[%c56, %c0_25] : memref<64x384xf32, #tpu.memory_space<vmem>>, vector<8x384xf32>
    %100 = vector.broadcast %3 : f32 to vector<8x384xf32>
    %101 = arith.subf %100, %98 : vector<8x384xf32>
    %102 = arith.addf %101, %99 : vector<8x384xf32>
    %103 = vector.broadcast %6 : f32 to vector<8x384xf32>
    %104 = arith.divf %102, %103 : vector<8x384xf32>
    %105 = arith.addf %98, %104 : vector<8x384xf32>
    %106 = vector.broadcast %4 : f32 to vector<8x384xf32>
    %107 = arith.cmpf oge, %105, %106 : vector<8x384xf32>
    %108 = arith.extui %107 : vector<8x384xi1> to vector<8x384xi8>
    %c56_26 = arith.constant 56 : index
    %c0_27 = arith.constant 0 : index
    %109 = vector.load %arg6[%c56_26, %c0_27] : memref<64x384xi8, #tpu.memory_space<vmem>>, vector<8x384xi8>
    tpu.vector_store %arg6[%c56_26, %c0_27], %108 {strides = array<i32>} : memref<64x384xi8, #tpu.memory_space<vmem>>, vector<8x384xi8>,
    %110 = vector.broadcast %5 : f32 to vector<8x384xf32>
    %111 = arith.select %107, %110, %105 : vector<8x384xi1>, vector<8x384xf32>
    %c0_28 = arith.constant 0 : index
    %c0_29 = arith.constant 0 : index
    %112 = vector.load %arg5[%c0_28, %c0_29] : memref<8x384xf32, #tpu.memory_space<vmem>>, vector<8x384xf32>
    tpu.vector_store %arg5[%c0_28, %c0_29], %111 {strides = array<i32>} : memref<8x384xf32, #tpu.memory_space<vmem>>, vector<8x384xf32>,
    return
  }
  func.func @transform_0(%arg0: i32, %arg1: i32) -> i32 {
    %c0_i32 = arith.constant 0 : i32
    %c0_i32_0 = arith.constant 0 : i32
    return %c0_i32 : i32
  }
  func.func @transform_1(%arg0: i32, %arg1: i32) -> (i32, i32) {
    %c0_i32 = arith.constant 0 : i32
    %c0_i32_0 = arith.constant 0 : i32
    return %c0_i32, %arg0 : i32, i32
  }
  func.func @transform_2(%arg0: i32, %arg1: i32) -> (i32, i32) {
    %c0_i32 = arith.constant 0 : i32
    return %arg1, %arg0 : i32, i32
  }
  func.func @transform_3(%arg0: i32, %arg1: i32) -> (i32, i32) {
    %c0_i32 = arith.constant 0 : i32
    %c0_i32_0 = arith.constant 0 : i32
    return %c0_i32, %arg0 : i32, i32
  }
  func.func @transform_4(%arg0: i32, %arg1: i32) -> (i32, i32) {
    %c0_i32 = arith.constant 0 : i32
    return %arg1, %arg0 : i32, i32
  }
}

</mosaic_0001>

<bundles_post_ra>
// kernel: tpu_custom_call.1
= control target key start
LH: loop header
LB: loop body
LE: loop exit
PB: predicated region body
PF: predicated region fallthrough
CT: control target
= control target key end

     0   :  { %10 = vsyncpa [#allocation5], 0  ;;  %s834_s0 = inlined_call_operand.hbm [shape: f32[4], index: 0, kind: input, shape index: {}]   ;;  %s835_s1 = inlined_call_operand.hbm [shape: f32[8,384], index: 1, kind: input, shape index: {}]   ;;  %s836_s2 = inlined_call_operand.hbm [shape: f32[64,384], index: 2, kind: input, shape index: {}]   ;;  %s837_s3 = inlined_call_operand.hbm [shape: f32[8,384], index: 3, kind: output, shape index: {0}]   ;;  %s838_s4 = inlined_call_operand.hbm [shape: s8[64,384], index: 4, kind: output, shape index: {1}]  }
   0x1   :  { %11 = vsyncpa [#allocation3], 0 }
   0x2   :  { %12 = vsyncpa [#allocation8], 0 }
   0x3   :  { %13 = vsyncpa [#allocation4], 0 }
   0x4   :  { %14 = vsyncpa [#allocation11], 0  ;;  %s20_s17 = sshll.u32 %s834_s0, 4  ;;  %s29_s20 = sshll.u32 %s835_s1, 4  ;;  %s21_s17 = int_to_ptr.hbm [resolvable:$true] %s20_s17  ;;  %s30_s20 = int_to_ptr.hbm [resolvable:$true] %s29_s20 }
   0x5   :  { %s623_s21 = smov [#allocation2]   ;;  %s624_s22 = smov [#allocation6]  }
   0x6   :  { %23 = dma.hbm_to_smem %s21_s17, 16, %s623_s21, [#allocation5]  }
   0x7   :  { %s31_s23 = sshll.u32 %s624_s22, 4  ;;  %s39_s26 = sshll.u32 %s836_s2, 4  ;;  %s32_s23 = int_to_ptr.vmem [resolvable:$true] %s31_s23  ;;  %s40_s26 = int_to_ptr.hbm [resolvable:$true] %s39_s26 }
   0x8   :  { %34 = dma.hbm_to_vmem [thread:$0]  %s30_s20, 384, %s32_s23, [#allocation3]  }
   0x9   :  { %s625_s27 = smov [#allocation7]   ;;  %s626_s0 = smov 384  }
   0xa   :  { %s41_s28 = sshll.u32 %s625_s27, 4  ;;  %s627_s29 = smov 24   ;;  %s42_s28 = int_to_ptr.vmem [resolvable:$true] %s41_s28 }
   0xb   :  { %47 = dma.hbm_to_vmem [thread:$0]  %s40_s26, 3072, %s42_s28, [#allocation8], %s626_s0, %s626_s0, %s627_s29  }
   0xc   :  { %613 = dma.done.wait [#allocation5], 16  }
   0xd   :  { %614 = vsyncadd [#allocation5], 4294967280 }
   0xe   :  { %615 = dma.done.wait [#allocation3], 384  }
   0xf   :  { %616 = vsyncadd [#allocation3], 4294966912 }
  0x10   :  { %617 = dma.done.wait [#allocation8], 3072  }
  0x11   :  { %618 = vsyncadd [#allocation8], 4294964224 }
  0x12   :  { %60 = sfence }
  0x13   :  { %s494_s1 = sld [smem:[#allocation2 + $0x3]]  ;;  %v67_v1 = vld [vmem:[#allocation6] sm:$0xff]  ;;  %v68_v2 = vld [vmem:[#allocation6 + $0x8] sm:$0xff]  ;;  %v69_v3 = vld [vmem:[#allocation6 + $0x10] sm:$0xff]  ;;  %v628_v37 = vmov 0   ;;  %s629_s6 = smov [#allocation9]  }
  0x14   :  { %s73_s2 = sld [smem:[#allocation2]]  ;;  %v80_v11 = vld [vmem:[#allocation7] sm:$0xff]  ;;  %v81_v14 = vld [vmem:[#allocation7 + $0x8] sm:$0xff]  ;;  %v82_v15 = vld [vmem:[#allocation7 + $0x10] sm:$0xff]  ;;  %s460_s7 = sshll.u32 %s629_s6, 4  ;;  %s461_s7 = int_to_ptr.vmem [resolvable:$true] %s460_s7 }
  0x15   :  { %s492_s30 = sld [smem:[#allocation2 + $0x1]]  ;;  %v140_v33 = vld [vmem:[#allocation7 + $0x18] sm:$0xff]  ;;  %v141_v35 = vld [vmem:[#allocation7 + $0x20] sm:$0xff]  ;;  %v142_v41 = vld [vmem:[#allocation7 + $0x28] sm:$0xff]  ;;  %s462_s10 = sshll.u32 %s837_s3, 4  ;;  %s463_s10 = int_to_ptr.hbm [resolvable:$true] %s462_s10 }
  0x16   :  { %s493_s5 = sld [smem:[#allocation2 + $0x2]]  ;;  %v185_v61 = vld [vmem:[#allocation7 + $0x30] sm:$0xff]  ;;  %v186_v63 = vld [vmem:[#allocation7 + $0x38] sm:$0xff]  ;;  %s630_s3 = smov [#allocation10]  }
  0x17   :  { %s470_s11 = sshll.u32 %s630_s3, 4  ;;  %s472_s14 = sshll.u32 %s838_s4, 4  ;;  %s471_s11 = int_to_ptr.vmem [resolvable:$true] %s470_s11  ;;  %s473_s14 = int_to_ptr.hbm [resolvable:$true] %s472_s14 }
  0x19   :  { %v90_v0 = vstv %s494_s1 }
  0x1a   :  { %503 = vrcp.f32 %v90_v0  ;;  %v668_v4 = vstv %s73_s2  ;;  %v102_v8 = vand.u32 2147483648, %v90_v0  ;;  %vm96_vm0 = vweird.f32 %v90_v0 }
  0x1b   :  { %v84_v7 = vsub.f32 %v668_v4, %v67_v1  ;;  %v85_v9 = vsub.f32 %v668_v4, %v68_v2  ;;  %v86_v10 = vsub.f32 %v668_v4, %v69_v3  ;;  %v100_v13 = vand.u32 2147483647, %v90_v0 }
  0x1c   :  { %v103_v18 = vor.u32 1.1754944e-38, %v102_v8  ;;  %v678_v27 = vstv %s492_s30  ;;  %v680_v29 = vstv %s493_s5 }
  0x1d   :  { %v87_v17 = vadd.f32 %v84_v7, %v80_v11  ;;  %vm101_vm3 = vcmp.eq.f32.partialorder %v100_v13, 8.507059e+37  ;;  %v88_v20 = vadd.f32 %v85_v9, %v81_v14  ;;  %v89_v21 = vadd.f32 %v86_v10, %v82_v15 }
  0x20   :  { %v504_v5 = vpop.eup %503 }
  0x21   :  { %v92_v6 = vmul.f32 %v504_v5, %v90_v0  ;;  %vm97_vm1 = vweird.f32 %v504_v5 }
  0x22   :  { %vm98_vm2 = vmor %vm96_vm0, %vm97_vm1 }
  0x23   :  { %v93_v12 = vsub.f32 1.0, %v92_v6 }
  0x25   :  { %v94_v16 = vmul.f32 %v504_v5, %v93_v12 }
  0x27   :  { %v95_v19 = vadd.f32 %v504_v5, %v94_v16 }
  0x29   :  { %v99_v22 = vsel %vm98_vm2, %v504_v5, %v95_v19  ;;  %v187_v5 = vld [vmem:[#allocation7 + $0x40] sm:$0xff] }
  0x2a   :  { %v673_v23 = vsel %vm101_vm3, %v103_v18, %v99_v22 }
  0x2b   :  { %v105_v24 = vmul.f32 %v673_v23, %v87_v17  ;;  %v106_v25 = vmul.f32 %v673_v23, %v88_v20  ;;  %v107_v26 = vmul.f32 %v673_v23, %v89_v21 }
  0x2d   :  { %v108_v28 = vadd.f32 %v105_v24, %v67_v1  ;;  %v109_v30 = vadd.f32 %v106_v25, %v68_v2  ;;  %v110_v31 = vadd.f32 %v107_v26, %v69_v3 }
  0x2f   :  { %vm112_vm4 = vcmp.ge.f32.partialorder %v108_v28, %v678_v27  ;;  %vm113_vm5 = vcmp.ge.f32.partialorder %v109_v30, %v678_v27  ;;  %vm114_vm6 = vcmp.ge.f32.partialorder %v110_v31, %v678_v27 }
  0x30   :  { %vm115_vm7 = vmpackc.low %vm112_vm4, %vm112_vm4  ;;  %v137_v32 = vsel %vm112_vm4, %v680_v29, %v108_v28  ;;  %v138_v34 = vsel %vm113_vm5, %v680_v29, %v109_v30  ;;  %v139_v36 = vsel %vm114_vm6, %v680_v29, %v110_v31  ;;  %v230_v31 = vld [vmem:[#allocation7 + $0x48] sm:$0xff] }
  0x31   :  { %v116_v38 = vsel %vm115_vm7, 16711935, %v628_v37  ;;  %v143_v39 = vsub.f32 %v668_v4, %v137_v32  ;;  %vm120_vm8 = vmpackc.low %vm113_vm5, %vm113_vm5  ;;  %v144_v40 = vsub.f32 %v668_v4, %v138_v34  ;;  %v145_v42 = vsub.f32 %v668_v4, %v139_v36 }
  0x32   :  { %v118_v43 = vpack.c.b8 %v116_v38, %v116_v38  ;;  %v121_v44 = vsel %vm120_vm8, 16711935, %v628_v37  ;;  %vm125_vm9 = vmpackc.low %vm114_vm6, %vm114_vm6 }
  0x33   :  { %v146_v45 = vadd.f32 %v143_v39, %v140_v33  ;;  %v123_v46 = vpack.c.b8 %v121_v44, %v121_v44  ;;  %v147_v47 = vadd.f32 %v144_v40, %v141_v35  ;;  %v126_v48 = vsel %vm125_vm9, 16711935, %v628_v37  ;;  %v231_v33 = vld [vmem:[#allocation7 + $0x50] sm:$0xff]  ;;  %v232_v39 = vld [vmem:[#allocation7 + $0x58] sm:$0xff] }
  0x34   :  { %vm119_vm10 = vnez %v118_v43  ;;  %v128_v49 = vpack.c.b8 %v126_v48, %v126_v48  ;;  %v148_v50 = vadd.f32 %v145_v42, %v142_v41 }
  0x35   :  { %v130_v51 = vsel %vm119_vm10, 16843009, %v628_v37  ;;  %vm124_vm11 = vnez %v123_v46  ;;  %v149_v52 = vmul.f32 %v146_v45, %v673_v23  ;;  %v150_v53 = vmul.f32 %v147_v47, %v673_v23 }
  0x36   :  { %133 = vst [vmem:[#allocation10] sm:$0x3] %v130_v51  ;;  %v131_v54 = vsel %vm124_vm11, 16843009, %v628_v37  ;;  %vm129_vm12 = vnez %v128_v49  ;;  %v151_v55 = vmul.f32 %v148_v50, %v673_v23 }
  0x37   :  { %134 = vst [vmem:[#allocation10 + $0x8] sm:$0x3] %v131_v54  ;;  %v132_v56 = vsel %vm129_vm12, 16843009, %v628_v37  ;;  %v152_v57 = vadd.f32 %v149_v52, %v137_v32  ;;  %v153_v58 = vadd.f32 %v150_v53, %v138_v34 }
  0x38   :  { %135 = vst [vmem:[#allocation10 + $0x10] sm:$0x3] %v132_v56  ;;  %v154_v59 = vadd.f32 %v151_v55, %v139_v36 }
  0x39   :  { %vm155_vm13 = vcmp.ge.f32.partialorder %v152_v57, %v678_v27  ;;  %vm156_vm14 = vcmp.ge.f32.partialorder %v153_v58, %v678_v27 }
  0x3a   :  { %vm158_vm15 = vmpackc.low %vm155_vm13, %vm155_vm13  ;;  %v182_v60 = vsel %vm155_vm13, %v680_v29, %v152_v57  ;;  %v183_v62 = vsel %vm156_vm14, %v680_v29, %v153_v58  ;;  %vm157_vm0 = vcmp.ge.f32.partialorder %v154_v59, %v678_v27 }
  0x3b   :  { %v159_v0 = vsel %vm158_vm15, 16711935, %v628_v37  ;;  %v188_v1 = vsub.f32 %v668_v4, %v182_v60  ;;  %vm163_vm1 = vmpackc.low %vm156_vm14, %vm156_vm14  ;;  %v189_v2 = vsub.f32 %v668_v4, %v183_v62  ;;  %v184_v3 = vsel %vm157_vm0, %v680_v29, %v154_v59 }
  0x3c   :  { %v161_v6 = vpack.c.b8 %v159_v0, %v159_v0  ;;  %v164_v7 = vsel %vm163_vm1, 16711935, %v628_v37  ;;  %vm168_vm2 = vmpackc.low %vm157_vm0, %vm157_vm0  ;;  %v190_v8 = vsub.f32 %v668_v4, %v184_v3  ;;  %v276_v0 = vld [vmem:[#allocation7 + $0x68] sm:$0xff] }
  0x3d   :  { %v191_v9 = vadd.f32 %v188_v1, %v185_v61  ;;  %v166_v10 = vpack.c.b8 %v164_v7, %v164_v7  ;;  %v192_v11 = vadd.f32 %v189_v2, %v186_v63  ;;  %v169_v12 = vsel %vm168_vm2, 16711935, %v628_v37 }
  0x3e   :  { %vm162_vm3 = vnez %v161_v6  ;;  %v171_v13 = vpack.c.b8 %v169_v12, %v169_v12  ;;  %v193_v14 = vadd.f32 %v190_v8, %v187_v5  ;;  %v277_v6 = vld [vmem:[#allocation7 + $0x70] sm:$0xff] }
  0x3f   :  { %v173_v15 = vsel %vm162_vm3, 16843009, %v628_v37  ;;  %vm167_vm4 = vnez %v166_v10  ;;  %v194_v16 = vmul.f32 %v191_v9, %v673_v23  ;;  %v195_v17 = vmul.f32 %v192_v11, %v673_v23 }
  0x40   :  { %v176_v18 = vrot.slane %v173_v15, 6  ;;  %v174_v19 = vsel %vm167_vm4, 16843009, %v628_v37  ;;  %vm172_vm5 = vnez %v171_v13  ;;  %v196_v20 = vmul.f32 %v193_v14, %v673_v23 }
  0x41   :  { %v177_v21 = vrot.slane %v174_v19, 6  ;;  %v175_v22 = vsel %vm172_vm5, 16843009, %v628_v37  ;;  %v197_v24 = vadd.f32 %v194_v16, %v182_v60  ;;  %v198_v25 = vadd.f32 %v195_v17, %v183_v62  ;;  %v275_v62 = vld [vmem:[#allocation7 + $0x60] sm:$0xff] }
  0x42   :  { %179 = vst [vmem:[#allocation10] sm:$0xc] %v176_v18  ;;  %v178_v26 = vrot.slane %v175_v22, 6  ;;  %v199_v28 = vadd.f32 %v196_v20, %v184_v3 }
  0x43   :  { %180 = vst [vmem:[#allocation10 + $0x8] sm:$0xc] %v177_v21  ;;  %vm200_vm6 = vcmp.ge.f32.partialorder %v197_v24, %v678_v27  ;;  %vm201_vm7 = vcmp.ge.f32.partialorder %v198_v25, %v678_v27 }
  0x44   :  { %181 = vst [vmem:[#allocation10 + $0x10] sm:$0xc] %v178_v26  ;;  %vm203_vm8 = vmpackc.low %vm200_vm6, %vm200_vm6  ;;  %v227_v30 = vsel %vm200_vm6, %v680_v29, %v197_v24  ;;  %v228_v32 = vsel %vm201_vm7, %v680_v29, %v198_v25  ;;  %vm202_vm9 = vcmp.ge.f32.partialorder %v199_v28, %v678_v27 }
  0x45   :  { %v204_v34 = vsel %vm203_vm8, 16711935, %v628_v37  ;;  %v233_v35 = vsub.f32 %v668_v4, %v227_v30  ;;  %vm208_vm10 = vmpackc.low %vm201_vm7, %vm201_vm7  ;;  %v234_v36 = vsub.f32 %v668_v4, %v228_v32  ;;  %v229_v38 = vsel %vm202_vm9, %v680_v29, %v199_v28 }
  0x46   :  { %v206_v40 = vpack.c.b8 %v204_v34, %v204_v34  ;;  %v209_v41 = vsel %vm208_vm10, 16711935, %v628_v37  ;;  %vm213_vm11 = vmpackc.low %vm202_vm9, %vm202_vm9  ;;  %v235_v42 = vsub.f32 %v668_v4, %v229_v38  ;;  %v318_v34 = vld [vmem:[#allocation7 + $0x80] sm:$0xff] }
  0x47   :  { %v236_v43 = vadd.f32 %v233_v35, %v230_v31  ;;  %v211_v44 = vpack.c.b8 %v209_v41, %v209_v41  ;;  %v237_v45 = vadd.f32 %v234_v36, %v231_v33  ;;  %v214_v46 = vsel %vm213_vm11, 16711935, %v628_v37 }
  0x48   :  { %vm207_vm12 = vnez %v206_v40  ;;  %v216_v47 = vpack.c.b8 %v214_v46, %v214_v46  ;;  %v238_v48 = vadd.f32 %v235_v42, %v232_v39  ;;  %v319_v40 = vld [vmem:[#allocation7 + $0x88] sm:$0xff] }
  0x49   :  { %v218_v49 = vsel %vm207_vm12, 16843009, %v628_v37  ;;  %vm212_vm13 = vnez %v211_v44  ;;  %v239_v50 = vmul.f32 %v236_v43, %v673_v23  ;;  %v240_v51 = vmul.f32 %v237_v45, %v673_v23 }
  0x4a   :  { %v221_v52 = vrot.slane %v218_v49, 4  ;;  %v219_v53 = vsel %vm212_vm13, 16843009, %v628_v37  ;;  %vm217_vm14 = vnez %v216_v47  ;;  %v241_v54 = vmul.f32 %v238_v48, %v673_v23 }
  0x4b   :  { %v222_v55 = vrot.slane %v219_v53, 4  ;;  %v220_v56 = vsel %vm217_vm14, 16843009, %v628_v37  ;;  %v242_v57 = vadd.f32 %v239_v50, %v227_v30  ;;  %v243_v58 = vadd.f32 %v240_v51, %v228_v32  ;;  %v317_v32 = vld [vmem:[#allocation7 + $0x78] sm:$0xff] }
  0x4c   :  { %224 = vst [vmem:[#allocation10] sm:$0x30] %v221_v52  ;;  %v223_v59 = vrot.slane %v220_v56, 4  ;;  %v244_v60 = vadd.f32 %v241_v54, %v229_v38 }
  0x4d   :  { %225 = vst [vmem:[#allocation10 + $0x8] sm:$0x30] %v222_v55  ;;  %vm245_vm15 = vcmp.ge.f32.partialorder %v242_v57, %v678_v27  ;;  %vm246_vm0 = vcmp.ge.f32.partialorder %v243_v58, %v678_v27 }
  0x4e   :  { %226 = vst [vmem:[#allocation10 + $0x10] sm:$0x30] %v223_v59  ;;  %vm248_vm1 = vmpackc.low %vm245_vm15, %vm245_vm15  ;;  %v272_v61 = vsel %vm245_vm15, %v680_v29, %v242_v57  ;;  %v273_v63 = vsel %vm246_vm0, %v680_v29, %v243_v58  ;;  %vm247_vm2 = vcmp.ge.f32.partialorder %v244_v60, %v678_v27 }
  0x4f   :  { %v249_v1 = vsel %vm248_vm1, 16711935, %v628_v37  ;;  %v278_v2 = vsub.f32 %v668_v4, %v272_v61  ;;  %vm253_vm3 = vmpackc.low %vm246_vm0, %vm246_vm0  ;;  %v279_v3 = vsub.f32 %v668_v4, %v273_v63  ;;  %v274_v5 = vsel %vm247_vm2, %v680_v29, %v244_v60  ;;  %v362_v60 = vld [vmem:[#allocation7 + $0x90] sm:$0xff] }
  0x50   :  { %v251_v7 = vpack.c.b8 %v249_v1, %v249_v1  ;;  %v254_v8 = vsel %vm253_vm3, 16711935, %v628_v37  ;;  %vm258_vm4 = vmpackc.low %vm247_vm2, %vm247_vm2  ;;  %v280_v9 = vsub.f32 %v668_v4, %v274_v5 }
  0x51   :  { %v281_v10 = vadd.f32 %v278_v2, %v275_v62  ;;  %v256_v11 = vpack.c.b8 %v254_v8, %v254_v8  ;;  %v282_v12 = vadd.f32 %v279_v3, %v276_v0  ;;  %v259_v13 = vsel %vm258_vm4, 16711935, %v628_v37  ;;  %v363_v62 = vld [vmem:[#allocation7 + $0x98] sm:$0xff]  ;;  %v364_v3 = vld [vmem:[#allocation7 + $0xa0] sm:$0xff] }
  0x52   :  { %vm252_vm5 = vnez %v251_v7  ;;  %v261_v14 = vpack.c.b8 %v259_v13, %v259_v13  ;;  %v283_v15 = vadd.f32 %v280_v9, %v277_v6 }
  0x53   :  { %v263_v16 = vsel %vm252_vm5, 16843009, %v628_v37  ;;  %vm257_vm6 = vnez %v256_v11  ;;  %v284_v17 = vmul.f32 %v281_v10, %v673_v23  ;;  %v285_v18 = vmul.f32 %v282_v12, %v673_v23 }
  0x54   :  { %v266_v19 = vrot.slane %v263_v16, 2  ;;  %v264_v20 = vsel %vm257_vm6, 16843009, %v628_v37  ;;  %vm262_vm7 = vnez %v261_v14  ;;  %v286_v21 = vmul.f32 %v283_v15, %v673_v23 }
  0x55   :  { %v267_v22 = vrot.slane %v264_v20, 2  ;;  %v265_v24 = vsel %vm262_vm7, 16843009, %v628_v37  ;;  %v287_v25 = vadd.f32 %v284_v17, %v272_v61  ;;  %v288_v26 = vadd.f32 %v285_v18, %v273_v63 }
  0x56   :  { %269 = vst [vmem:[#allocation10] sm:$0xc0] %v266_v19  ;;  %v268_v28 = vrot.slane %v265_v24, 2  ;;  %v289_v30 = vadd.f32 %v286_v21, %v274_v5 }
  0x57   :  { %270 = vst [vmem:[#allocation10 + $0x8] sm:$0xc0] %v267_v22  ;;  %vm290_vm8 = vcmp.ge.f32.partialorder %v287_v25, %v678_v27  ;;  %vm291_vm9 = vcmp.ge.f32.partialorder %v288_v26, %v678_v27 }
  0x58   :  { %271 = vst [vmem:[#allocation10 + $0x10] sm:$0xc0] %v268_v28  ;;  %vm293_vm10 = vmpackc.low %vm290_vm8, %vm290_vm8  ;;  %v314_v31 = vsel %vm290_vm8, %v680_v29, %v287_v25  ;;  %v315_v33 = vsel %vm291_vm9, %v680_v29, %v288_v26  ;;  %vm292_vm11 = vcmp.ge.f32.partialorder %v289_v30, %v678_v27 }
  0x59   :  { %v294_v35 = vsel %vm293_vm10, 16711935, %v628_v37  ;;  %v320_v36 = vsub.f32 %v668_v4, %v314_v31  ;;  %vm298_vm12 = vmpackc.low %vm291_vm9, %vm291_vm9  ;;  %v321_v38 = vsub.f32 %v668_v4, %v315_v33  ;;  %v316_v39 = vsel %vm292_vm11, %v680_v29, %v289_v30  ;;  %v407_v30 = vld [vmem:[#allocation7 + $0xa8] sm:$0xff] }
  0x5a   :  { %v296_v41 = vpack.c.b8 %v294_v35, %v294_v35  ;;  %v299_v42 = vsel %vm298_vm12, 16711935, %v628_v37  ;;  %vm303_vm13 = vmpackc.low %vm292_vm11, %vm292_vm11  ;;  %v322_v43 = vsub.f32 %v668_v4, %v316_v39 }
  0x5b   :  { %v323_v44 = vadd.f32 %v320_v36, %v317_v32  ;;  %v301_v45 = vpack.c.b8 %v299_v42, %v299_v42  ;;  %v324_v46 = vadd.f32 %v321_v38, %v318_v34  ;;  %v304_v47 = vsel %vm303_vm13, 16711935, %v628_v37  ;;  %v408_v32 = vld [vmem:[#allocation7 + $0xb0] sm:$0xff]  ;;  %v409_v38 = vld [vmem:[#allocation7 + $0xb8] sm:$0xff] }
  0x5c   :  { %vm297_vm14 = vnez %v296_v41  ;;  %v306_v48 = vpack.c.b8 %v304_v47, %v304_v47  ;;  %v325_v49 = vadd.f32 %v322_v43, %v319_v40 }
  0x5d   :  { %v308_v50 = vsel %vm297_vm14, 16843009, %v628_v37  ;;  %vm302_vm15 = vnez %v301_v45  ;;  %v326_v51 = vmul.f32 %v323_v44, %v673_v23  ;;  %v327_v52 = vmul.f32 %v324_v46, %v673_v23 }
  0x5e   :  { %311 = vst [vmem:[#allocation10 + $0x18] sm:$0x3] %v308_v50  ;;  %v309_v53 = vsel %vm302_vm15, 16843009, %v628_v37  ;;  %vm307_vm0 = vnez %v306_v48  ;;  %v328_v54 = vmul.f32 %v325_v49, %v673_v23 }
  0x5f   :  { %312 = vst [vmem:[#allocation10 + $0x20] sm:$0x3] %v309_v53  ;;  %v310_v55 = vsel %vm307_vm0, 16843009, %v628_v37  ;;  %v329_v56 = vadd.f32 %v326_v51, %v314_v31  ;;  %v330_v57 = vadd.f32 %v327_v52, %v315_v33 }
  0x60   :  { %313 = vst [vmem:[#allocation10 + $0x28] sm:$0x3] %v310_v55  ;;  %v331_v58 = vadd.f32 %v328_v54, %v316_v39 }
  0x61   :  { %vm332_vm1 = vcmp.ge.f32.partialorder %v329_v56, %v678_v27  ;;  %vm333_vm2 = vcmp.ge.f32.partialorder %v330_v57, %v678_v27 }
  0x62   :  { %vm335_vm3 = vmpackc.low %vm332_vm1, %vm332_vm1  ;;  %v359_v59 = vsel %vm332_vm1, %v680_v29, %v329_v56  ;;  %v360_v61 = vsel %vm333_vm2, %v680_v29, %v330_v57  ;;  %vm334_vm4 = vcmp.ge.f32.partialorder %v331_v58, %v678_v27 }
  0x63   :  { %v336_v63 = vsel %vm335_vm3, 16711935, %v628_v37  ;;  %v365_v0 = vsub.f32 %v668_v4, %v359_v59  ;;  %vm340_vm5 = vmpackc.low %vm333_vm2, %vm333_vm2  ;;  %v366_v1 = vsub.f32 %v668_v4, %v360_v61  ;;  %v361_v2 = vsel %vm334_vm4, %v680_v29, %v331_v58 }
  0x64   :  { %v338_v5 = vpack.c.b8 %v336_v63, %v336_v63  ;;  %v341_v6 = vsel %vm340_vm5, 16711935, %v628_v37  ;;  %vm345_vm6 = vmpackc.low %vm334_vm4, %vm334_vm4  ;;  %v367_v7 = vsub.f32 %v668_v4, %v361_v2 }
  0x65   :  { %v368_v8 = vadd.f32 %v365_v0, %v362_v60  ;;  %v343_v9 = vpack.c.b8 %v341_v6, %v341_v6  ;;  %v369_v10 = vadd.f32 %v366_v1, %v363_v62  ;;  %v346_v11 = vsel %vm345_vm6, 16711935, %v628_v37 }
  0x66   :  { %vm339_vm7 = vnez %v338_v5  ;;  %v348_v12 = vpack.c.b8 %v346_v11, %v346_v11  ;;  %v370_v13 = vadd.f32 %v367_v7, %v364_v3 }
  0x67   :  { %v350_v14 = vsel %vm339_vm7, 16843009, %v628_v37  ;;  %vm344_vm8 = vnez %v343_v9  ;;  %v371_v15 = vmul.f32 %v368_v8, %v673_v23  ;;  %v372_v16 = vmul.f32 %v369_v10, %v673_v23 }
  0x68   :  { %v353_v17 = vrot.slane %v350_v14, 6  ;;  %v351_v18 = vsel %vm344_vm8, 16843009, %v628_v37  ;;  %vm349_vm9 = vnez %v348_v12  ;;  %v373_v19 = vmul.f32 %v370_v13, %v673_v23 }
  0x69   :  { %v354_v20 = vrot.slane %v351_v18, 6  ;;  %v352_v21 = vsel %vm349_vm9, 16843009, %v628_v37  ;;  %v374_v22 = vadd.f32 %v371_v15, %v359_v59  ;;  %v375_v24 = vadd.f32 %v372_v16, %v360_v61 }
  0x6a   :  { %356 = vst [vmem:[#allocation10 + $0x18] sm:$0xc] %v353_v17  ;;  %v355_v25 = vrot.slane %v352_v21, 6  ;;  %v376_v26 = vadd.f32 %v373_v19, %v361_v2 }
  0x6b   :  { %357 = vst [vmem:[#allocation10 + $0x20] sm:$0xc] %v354_v20  ;;  %vm377_vm10 = vcmp.ge.f32.partialorder %v374_v22, %v678_v27  ;;  %vm378_vm11 = vcmp.ge.f32.partialorder %v375_v24, %v678_v27 }
  0x6c   :  { %358 = vst [vmem:[#allocation10 + $0x28] sm:$0xc] %v355_v25  ;;  %vm380_vm12 = vmpackc.low %vm377_vm10, %vm377_vm10  ;;  %v404_v28 = vsel %vm377_vm10, %v680_v29, %v374_v22  ;;  %v405_v31 = vsel %vm378_vm11, %v680_v29, %v375_v24  ;;  %vm379_vm13 = vcmp.ge.f32.partialorder %v376_v26, %v678_v27 }
  0x6d   :  { %v381_v33 = vsel %vm380_vm12, 16711935, %v628_v37  ;;  %v410_v34 = vsub.f32 %v668_v4, %v404_v28  ;;  %vm385_vm14 = vmpackc.low %vm378_vm11, %vm378_vm11  ;;  %v411_v35 = vsub.f32 %v668_v4, %v405_v31  ;;  %v406_v36 = vsel %vm379_vm13, %v680_v29, %v376_v26 }
  0x6e   :  { %v383_v39 = vpack.c.b8 %v381_v33, %v381_v33  ;;  %v386_v40 = vsel %vm385_vm14, 16711935, %v628_v37  ;;  %vm390_vm15 = vmpackc.low %vm379_vm13, %vm379_vm13  ;;  %v412_v41 = vsub.f32 %v668_v4, %v406_v36 }
  0x6f   :  { %v413_v42 = vadd.f32 %v410_v34, %v407_v30  ;;  %v388_v43 = vpack.c.b8 %v386_v40, %v386_v40  ;;  %v414_v44 = vadd.f32 %v411_v35, %v408_v32  ;;  %v391_v45 = vsel %vm390_vm15, 16711935, %v628_v37 }
  0x70   :  { %vm384_vm0 = vnez %v383_v39  ;;  %v393_v46 = vpack.c.b8 %v391_v45, %v391_v45  ;;  %v415_v47 = vadd.f32 %v412_v41, %v409_v38 }
  0x71   :  { %v395_v48 = vsel %vm384_vm0, 16843009, %v628_v37  ;;  %vm389_vm1 = vnez %v388_v43  ;;  %v416_v49 = vmul.f32 %v413_v42, %v673_v23  ;;  %v417_v50 = vmul.f32 %v414_v44, %v673_v23 }
  0x72   :  { %v398_v51 = vrot.slane %v395_v48, 4  ;;  %v396_v52 = vsel %vm389_vm1, 16843009, %v628_v37  ;;  %vm394_vm2 = vnez %v393_v46  ;;  %v418_v4 = vmul.f32 %v415_v47, %v673_v23 }
  0x73   :  { %v399_v53 = vrot.slane %v396_v52, 4  ;;  %v397_v54 = vsel %vm394_vm2, 16843009, %v628_v37  ;;  %v419_v55 = vadd.f32 %v416_v49, %v404_v28  ;;  %v420_v56 = vadd.f32 %v417_v50, %v405_v31 }
  0x74   :  { %401 = vst [vmem:[#allocation10 + $0x18] sm:$0x30] %v398_v51  ;;  %v400_v57 = vrot.slane %v397_v54, 4  ;;  %v421_v58 = vadd.f32 %v418_v4, %v406_v36 }
  0x75   :  { %402 = vst [vmem:[#allocation10 + $0x20] sm:$0x30] %v399_v53  ;;  %vm422_vm3 = vcmp.ge.f32.partialorder %v419_v55, %v678_v27  ;;  %vm423_vm4 = vcmp.ge.f32.partialorder %v420_v56, %v678_v27 }
  0x76   :  { %403 = vst [vmem:[#allocation10 + $0x28] sm:$0x30] %v400_v57  ;;  %v449_v23 = vsel %vm422_vm3, %v680_v29, %v419_v55  ;;  %v450_v59 = vsel %vm423_vm4, %v680_v29, %v420_v56  ;;  %vm424_vm5 = vcmp.ge.f32.partialorder %v421_v58, %v678_v27  ;;  %vm425_vm6 = vmpackc.low %vm422_vm3, %vm422_vm3 }
  0x77   :  { %452 = vst [vmem:[#allocation9] sm:$0xff] %v449_v23  ;;  %v451_v60 = vsel %vm424_vm5, %v680_v29, %v421_v58  ;;  %v426_v61 = vsel %vm425_vm6, 16711935, %v628_v37  ;;  %vm430_vm7 = vmpackc.low %vm423_vm4, %vm423_vm4 }
  0x78   :  { %453 = vst [vmem:[#allocation9 + $0x8] sm:$0xff] %v450_v59  ;;  %v428_v62 = vpack.c.b8 %v426_v61, %v426_v61  ;;  %v431_v63 = vsel %vm430_vm7, 16711935, %v628_v37  ;;  %vm435_vm8 = vmpackc.low %vm424_vm5, %vm424_vm5 }
  0x79   :  { %454 = vst [vmem:[#allocation9 + $0x10] sm:$0xff] %v451_v60  ;;  %v433_v0 = vpack.c.b8 %v431_v63, %v431_v63  ;;  %v436_v1 = vsel %vm435_vm8, 16711935, %v628_v37 }
  0x7a   :  { %vm429_vm9 = vnez %v428_v62  ;;  %v438_v27 = vpack.c.b8 %v436_v1, %v436_v1  ;;  %465 = dma.vmem_to_hbm [thread:$0]  %s461_s7, 384, %s463_s10, [#allocation4]  }
  0x7b   :  { %v440_v2 = vsel %vm429_vm9, 16843009, %v628_v37  ;;  %vm434_vm10 = vnez %v433_v0 }
  0x7c   :  { %v443_v29 = vrot.slane %v440_v2, 2  ;;  %v441_v3 = vsel %vm434_vm10, 16843009, %v628_v37  ;;  %vm439_vm11 = vnez %v438_v27 }
  0x7d   :  { %v444_v5 = vrot.slane %v441_v3, 2  ;;  %v442_v6 = vsel %vm439_vm11, 16843009, %v628_v37 }
  0x7e   :  { %446 = vst [vmem:[#allocation10 + $0x18] sm:$0xc0] %v443_v29  ;;  %v445_v7 = vrot.slane %v442_v6, 2 }
  0x7f   :  { %447 = vst [vmem:[#allocation10 + $0x20] sm:$0xc0] %v444_v5 }
  0x80   :  { %448 = vst [vmem:[#allocation10 + $0x28] sm:$0xc0] %v445_v7 }
  0x81   :  { %478 = dma.vmem_to_hbm [thread:$0]  %s471_s11, 768, %s473_s14, [#allocation11], %s626_s0, %s626_s0, %s627_s29  }
  0x82   :  { %619 = dma.done.wait [#allocation4], 384  }
  0x83   :  { %620 = vsyncadd [#allocation4], 4294966912 }
  0x84   :  { %621 = dma.done.wait [#allocation11], 768  }
  0x85   :  { %622 = vsyncadd [#allocation11], 4294966528 }
  0x86   :  { %487 = vsyncpa [#allocation3], 1 }
  0x87   :  { %488 = vsyncpa [#allocation8], 1 }
  0x88   :  { %489 = vsyncpa [#allocation4], 1 }
  0x89   :  { %490 = vsyncpa [#allocation11], 1 }
  0x8a   :  { %491 = vsyncpa [#allocation5], 1 }

</bundles_post_ra>
